<compile_context>
chip_gen: v7x
topology: tpu7x:2x2x1
jax: 0.10.0
libtpu: 0.0.40
codegen_flags: <defaults>
</compile_context>

<pallas_src>
import jax
import jax.numpy as jnp
from jax.experimental import pallas as pl
from jax.experimental.pallas import tpu as pltpu

input_size = 4
hidden_size = 5
num_classes = 3


def mlp_kernel(x_ref, w1_ref, b1_ref, w2_ref, b2_ref, o_ref):
    # x_ref: (input_size, BT) f32 in VMEM (batch on the lane axis).
    # w1_ref (5,4), b1_ref (5,), w2_ref (3,5), b2_ref (3,): f32 in SMEM.
    x = x_ref[...]
    xk = [x[k:k + 1, :] for k in range(input_size)]          # (1, BT) feature rows

    # Layer 1: h_j = tanh(b1[j] + sum_k w1[j, k] * x[k, :])  -- VPU FMAs + EUP tanh.
    h = []
    for j in range(hidden_size):
        acc = xk[0] * w1_ref[j, 0] + b1_ref[j]
        for k in range(1, input_size):
            acc = acc + xk[k] * w1_ref[j, k]
        h.append(jnp.tanh(acc))

    # Layer 2: logits_i = b2[i] + sum_j w2[i, j] * h_j
    logits = []
    for i in range(num_classes):
        acc = h[0] * w2_ref[i, 0] + b2_ref[i]
        for j in range(1, hidden_size):
            acc = acc + h[j] * w2_ref[i, j]
        logits.append(acc)

    # Softmax over the class rows -- purely elementwise (no XLU reduction).
    m = logits[0]
    for i in range(1, num_classes):
        m = jnp.maximum(m, logits[i])
    exps = [jnp.exp(l - m) for l in logits]
    denom = exps[0]
    for i in range(1, num_classes):
        denom = denom + exps[i]
    inv = pl.reciprocal(denom, approx=True)                  # EUP slot (free-ish)
    inv = inv * (2.0 - denom * inv)                          # 1 Newton step -> ~f32 accuracy
    o_ref[...] = jnp.concatenate([e * inv for e in exps], axis=0)


def _round_up(n, m):
    return ((n + m - 1) // m) * m


def mlp_forward(x, w1, b1, w2, b2, *, block_b=2048):
    """x: (B, input_size); w1: (hidden, in); b1: (hidden,);
    w2: (classes, hidden); b2: (classes,)  -- PyTorch nn.Linear parameter layout."""
    B = x.shape[0]
    bt = min(block_b, _round_up(max(B, 1), 128))   # lane-aligned batch tile
    b_pad = _round_up(B, bt)

    # Put batch on the lane (last) axis; zero-pad up to the tile boundary.
    x_t = jnp.pad(x.T.astype(jnp.float32), ((0, 0), (0, b_pad - B)))

    smem = pl.BlockSpec(memory_space=pltpu.MemorySpace.SMEM)
    out_t = pl.pallas_call(
        mlp_kernel,
        out_shape=jax.ShapeDtypeStruct((num_classes, b_pad), jnp.float32),
        grid=(b_pad // bt,),
        in_specs=[
            pl.BlockSpec((input_size, bt), lambda i: (0, i)),   # x: batch-tiled VMEM
            smem, smem, smem, smem,                              # tiny params, whole in SMEM
        ],
        out_specs=pl.BlockSpec((num_classes, bt), lambda i: (0, i)),
        compiler_params=pltpu.CompilerParams(
            dimension_semantics=("parallel",)),
    )(x_t,
      w1.astype(jnp.float32), b1.astype(jnp.float32),
      w2.astype(jnp.float32), b2.astype(jnp.float32))

    # Un-transpose back to the PyTorch (B, num_classes) layout, drop padding.
    return out_t[:, :B].T


def _init_linear(key, out_features, in_features):
    # Deterministic init mimicking PyTorch nn.Linear: U(-1/sqrt(fan_in), 1/sqrt(fan_in))
    kw, kb = jax.random.split(key)
    bound = 1.0 / jnp.sqrt(jnp.float32(in_features))
    w = jax.random.uniform(kw, (out_features, in_features), jnp.float32, -bound, bound)
    b = jax.random.uniform(kb, (out_features,), jnp.float32, -bound, bound)
    return w, b


if __name__ == "__main__":
    key = jax.random.PRNGKey(0)
    kx, k1, k2 = jax.random.split(key, 3)

    batch = 8
    x = jax.random.normal(kx, (batch, input_size), jnp.float32)
    w1, b1 = _init_linear(k1, hidden_size, input_size)
    w2, b2 = _init_linear(k2, num_classes, hidden_size)

    fwd = jax.jit(mlp_forward)           # hoists wrapper transpose/pad into one graph
    out = jax.block_until_ready(fwd(x, w1, b1, w2, b2))

    # Sanity check against pure-JAX reference.
    ref = jax.nn.softmax(jnp.tanh(x @ w1.T + b1) @ w2.T + b2, axis=-1)
    assert out.shape == (batch, num_classes)
    assert jnp.allclose(out, ref, atol=1e-4, rtol=1e-4)

    print("KERNEL_OK")
</pallas_src>

<mosaic_0001>
module attributes {stable_mosaic.version = 11 : i64} {
  func.func @mlp_kernel(%arg0: i32, %arg1: memref<4x128xf32, #tpu.memory_space<vmem>>, %arg2: memref<5x4xf32, #tpu.memory_space<smem>>, %arg3: memref<5xf32, #tpu.memory_space<smem>>, %arg4: memref<3x5xf32, #tpu.memory_space<smem>>, %arg5: memref<3xf32, #tpu.memory_space<smem>>, %arg6: memref<3x128xf32, #tpu.memory_space<vmem>>) attributes {dimension_semantics = [#tpu.dimension_semantics<parallel>], iteration_bounds = array<i64: 1>, scalar_prefetch = 0 : i64, scratch_operands = 0 : i64, tpu.core_type = #tpu.core_type<tc>, window_params = [{transform_indices = @transform_0, window_bounds = array<i64: 4, 128>}, {transform_indices = @transform_1, window_bounds = array<i64: 5, 4>}, {transform_indices = @transform_2, window_bounds = array<i64: 5>}, {transform_indices = @transform_3, window_bounds = array<i64: 3, 5>}, {transform_indices = @transform_4, window_bounds = array<i64: 3>}, {transform_indices = @transform_5, window_bounds = array<i64: 3, 128>}]} {
    %c0 = arith.constant 0 : index
    %c0_0 = arith.constant 0 : index
    %0 = vector.load %arg1[%c0, %c0_0] : memref<4x128xf32, #tpu.memory_space<vmem>>, vector<4x128xf32>
    %1 = vector.extract_strided_slice %0 {offsets = [0, 0], sizes = [1, 128], strides = [1, 1]} : vector<4x128xf32> to vector<1x128xf32>
    %2 = vector.extract_strided_slice %0 {offsets = [1, 0], sizes = [1, 128], strides = [1, 1]} : vector<4x128xf32> to vector<1x128xf32>
    %3 = vector.extract_strided_slice %0 {offsets = [2, 0], sizes = [1, 128], strides = [1, 1]} : vector<4x128xf32> to vector<1x128xf32>
    %4 = vector.extract_strided_slice %0 {offsets = [3, 0], sizes = [1, 128], strides = [1, 1]} : vector<4x128xf32> to vector<1x128xf32>
    %c0_1 = arith.constant 0 : index
    %c0_2 = arith.constant 0 : index
    %5 = memref.load %arg2[%c0_1, %c0_2] : memref<5x4xf32, #tpu.memory_space<smem>>
    %6 = vector.broadcast %5 : f32 to vector<1x128xf32>
    %7 = arith.mulf %1, %6 : vector<1x128xf32>
    %c0_3 = arith.constant 0 : index
    %8 = memref.load %arg3[%c0_3] : memref<5xf32, #tpu.memory_space<smem>>
    %9 = vector.broadcast %8 : f32 to vector<1x128xf32>
    %10 = arith.addf %7, %9 : vector<1x128xf32>
    %c0_4 = arith.constant 0 : index
    %c1 = arith.constant 1 : index
    %11 = memref.load %arg2[%c0_4, %c1] : memref<5x4xf32, #tpu.memory_space<smem>>
    %12 = vector.broadcast %11 : f32 to vector<1x128xf32>
    %13 = arith.mulf %2, %12 : vector<1x128xf32>
    %14 = arith.addf %10, %13 : vector<1x128xf32>
    %c0_5 = arith.constant 0 : index
    %c2 = arith.constant 2 : index
    %15 = memref.load %arg2[%c0_5, %c2] : memref<5x4xf32, #tpu.memory_space<smem>>
    %16 = vector.broadcast %15 : f32 to vector<1x128xf32>
    %17 = arith.mulf %3, %16 : vector<1x128xf32>
    %18 = arith.addf %14, %17 : vector<1x128xf32>
    %c0_6 = arith.constant 0 : index
    %c3 = arith.constant 3 : index
    %19 = memref.load %arg2[%c0_6, %c3] : memref<5x4xf32, #tpu.memory_space<smem>>
    %20 = vector.broadcast %19 : f32 to vector<1x128xf32>
    %21 = arith.mulf %4, %20 : vector<1x128xf32>
    %22 = arith.addf %18, %21 : vector<1x128xf32>
    %23 = math.tanh %22 : vector<1x128xf32>
    %c1_7 = arith.constant 1 : index
    %c0_8 = arith.constant 0 : index
    %24 = memref.load %arg2[%c1_7, %c0_8] : memref<5x4xf32, #tpu.memory_space<smem>>
    %25 = vector.broadcast %24 : f32 to vector<1x128xf32>
    %26 = arith.mulf %1, %25 : vector<1x128xf32>
    %c1_9 = arith.constant 1 : index
    %27 = memref.load %arg3[%c1_9] : memref<5xf32, #tpu.memory_space<smem>>
    %28 = vector.broadcast %27 : f32 to vector<1x128xf32>
    %29 = arith.addf %26, %28 : vector<1x128xf32>
    %c1_10 = arith.constant 1 : index
    %c1_11 = arith.constant 1 : index
    %30 = memref.load %arg2[%c1_10, %c1_11] : memref<5x4xf32, #tpu.memory_space<smem>>
    %31 = vector.broadcast %30 : f32 to vector<1x128xf32>
    %32 = arith.mulf %2, %31 : vector<1x128xf32>
    %33 = arith.addf %29, %32 : vector<1x128xf32>
    %c1_12 = arith.constant 1 : index
    %c2_13 = arith.constant 2 : index
    %34 = memref.load %arg2[%c1_12, %c2_13] : memref<5x4xf32, #tpu.memory_space<smem>>
    %35 = vector.broadcast %34 : f32 to vector<1x128xf32>
    %36 = arith.mulf %3, %35 : vector<1x128xf32>
    %37 = arith.addf %33, %36 : vector<1x128xf32>
    %c1_14 = arith.constant 1 : index
    %c3_15 = arith.constant 3 : index
    %38 = memref.load %arg2[%c1_14, %c3_15] : memref<5x4xf32, #tpu.memory_space<smem>>
    %39 = vector.broadcast %38 : f32 to vector<1x128xf32>
    %40 = arith.mulf %4, %39 : vector<1x128xf32>
    %41 = arith.addf %37, %40 : vector<1x128xf32>
    %42 = math.tanh %41 : vector<1x128xf32>
    %c2_16 = arith.constant 2 : index
    %c0_17 = arith.constant 0 : index
    %43 = memref.load %arg2[%c2_16, %c0_17] : memref<5x4xf32, #tpu.memory_space<smem>>
    %44 = vector.broadcast %43 : f32 to vector<1x128xf32>
    %45 = arith.mulf %1, %44 : vector<1x128xf32>
    %c2_18 = arith.constant 2 : index
    %46 = memref.load %arg3[%c2_18] : memref<5xf32, #tpu.memory_space<smem>>
    %47 = vector.broadcast %46 : f32 to vector<1x128xf32>
    %48 = arith.addf %45, %47 : vector<1x128xf32>
    %c2_19 = arith.constant 2 : index
    %c1_20 = arith.constant 1 : index
    %49 = memref.load %arg2[%c2_19, %c1_20] : memref<5x4xf32, #tpu.memory_space<smem>>
    %50 = vector.broadcast %49 : f32 to vector<1x128xf32>
    %51 = arith.mulf %2, %50 : vector<1x128xf32>
    %52 = arith.addf %48, %51 : vector<1x128xf32>
    %c2_21 = arith.constant 2 : index
    %c2_22 = arith.constant 2 : index
    %53 = memref.load %arg2[%c2_21, %c2_22] : memref<5x4xf32, #tpu.memory_space<smem>>
    %54 = vector.broadcast %53 : f32 to vector<1x128xf32>
    %55 = arith.mulf %3, %54 : vector<1x128xf32>
    %56 = arith.addf %52, %55 : vector<1x128xf32>
    %c2_23 = arith.constant 2 : index
    %c3_24 = arith.constant 3 : index
    %57 = memref.load %arg2[%c2_23, %c3_24] : memref<5x4xf32, #tpu.memory_space<smem>>
    %58 = vector.broadcast %57 : f32 to vector<1x128xf32>
    %59 = arith.mulf %4, %58 : vector<1x128xf32>
    %60 = arith.addf %56, %59 : vector<1x128xf32>
    %61 = math.tanh %60 : vector<1x128xf32>
    %c3_25 = arith.constant 3 : index
    %c0_26 = arith.constant 0 : index
    %62 = memref.load %arg2[%c3_25, %c0_26] : memref<5x4xf32, #tpu.memory_space<smem>>
    %63 = vector.broadcast %62 : f32 to vector<1x128xf32>
    %64 = arith.mulf %1, %63 : vector<1x128xf32>
    %c3_27 = arith.constant 3 : index
    %65 = memref.load %arg3[%c3_27] : memref<5xf32, #tpu.memory_space<smem>>
    %66 = vector.broadcast %65 : f32 to vector<1x128xf32>
    %67 = arith.addf %64, %66 : vector<1x128xf32>
    %c3_28 = arith.constant 3 : index
    %c1_29 = arith.constant 1 : index
    %68 = memref.load %arg2[%c3_28, %c1_29] : memref<5x4xf32, #tpu.memory_space<smem>>
    %69 = vector.broadcast %68 : f32 to vector<1x128xf32>
    %70 = arith.mulf %2, %69 : vector<1x128xf32>
    %71 = arith.addf %67, %70 : vector<1x128xf32>
    %c3_30 = arith.constant 3 : index
    %c2_31 = arith.constant 2 : index
    %72 = memref.load %arg2[%c3_30, %c2_31] : memref<5x4xf32, #tpu.memory_space<smem>>
    %73 = vector.broadcast %72 : f32 to vector<1x128xf32>
    %74 = arith.mulf %3, %73 : vector<1x128xf32>
    %75 = arith.addf %71, %74 : vector<1x128xf32>
    %c3_32 = arith.constant 3 : index
    %c3_33 = arith.constant 3 : index
    %76 = memref.load %arg2[%c3_32, %c3_33] : memref<5x4xf32, #tpu.memory_space<smem>>
    %77 = vector.broadcast %76 : f32 to vector<1x128xf32>
    %78 = arith.mulf %4, %77 : vector<1x128xf32>
    %79 = arith.addf %75, %78 : vector<1x128xf32>
    %80 = math.tanh %79 : vector<1x128xf32>
    %c4 = arith.constant 4 : index
    %c0_34 = arith.constant 0 : index
    %81 = memref.load %arg2[%c4, %c0_34] : memref<5x4xf32, #tpu.memory_space<smem>>
    %82 = vector.broadcast %81 : f32 to vector<1x128xf32>
    %83 = arith.mulf %1, %82 : vector<1x128xf32>
    %c4_35 = arith.constant 4 : index
    %84 = memref.load %arg3[%c4_35] : memref<5xf32, #tpu.memory_space<smem>>
    %85 = vector.broadcast %84 : f32 to vector<1x128xf32>
    %86 = arith.addf %83, %85 : vector<1x128xf32>
    %c4_36 = arith.constant 4 : index
    %c1_37 = arith.constant 1 : index
    %87 = memref.load %arg2[%c4_36, %c1_37] : memref<5x4xf32, #tpu.memory_space<smem>>
    %88 = vector.broadcast %87 : f32 to vector<1x128xf32>
    %89 = arith.mulf %2, %88 : vector<1x128xf32>
    %90 = arith.addf %86, %89 : vector<1x128xf32>
    %c4_38 = arith.constant 4 : index
    %c2_39 = arith.constant 2 : index
    %91 = memref.load %arg2[%c4_38, %c2_39] : memref<5x4xf32, #tpu.memory_space<smem>>
    %92 = vector.broadcast %91 : f32 to vector<1x128xf32>
    %93 = arith.mulf %3, %92 : vector<1x128xf32>
    %94 = arith.addf %90, %93 : vector<1x128xf32>
    %c4_40 = arith.constant 4 : index
    %c3_41 = arith.constant 3 : index
    %95 = memref.load %arg2[%c4_40, %c3_41] : memref<5x4xf32, #tpu.memory_space<smem>>
    %96 = vector.broadcast %95 : f32 to vector<1x128xf32>
    %97 = arith.mulf %4, %96 : vector<1x128xf32>
    %98 = arith.addf %94, %97 : vector<1x128xf32>
    %99 = math.tanh %98 : vector<1x128xf32>
    %c0_42 = arith.constant 0 : index
    %c0_43 = arith.constant 0 : index
    %100 = memref.load %arg4[%c0_42, %c0_43] : memref<3x5xf32, #tpu.memory_space<smem>>
    %101 = vector.broadcast %100 : f32 to vector<1x128xf32>
    %102 = arith.mulf %23, %101 : vector<1x128xf32>
    %c0_44 = arith.constant 0 : index
    %103 = memref.load %arg5[%c0_44] : memref<3xf32, #tpu.memory_space<smem>>
    %104 = vector.broadcast %103 : f32 to vector<1x128xf32>
    %105 = arith.addf %102, %104 : vector<1x128xf32>
    %c0_45 = arith.constant 0 : index
    %c1_46 = arith.constant 1 : index
    %106 = memref.load %arg4[%c0_45, %c1_46] : memref<3x5xf32, #tpu.memory_space<smem>>
    %107 = vector.broadcast %106 : f32 to vector<1x128xf32>
    %108 = arith.mulf %42, %107 : vector<1x128xf32>
    %109 = arith.addf %105, %108 : vector<1x128xf32>
    %c0_47 = arith.constant 0 : index
    %c2_48 = arith.constant 2 : index
    %110 = memref.load %arg4[%c0_47, %c2_48] : memref<3x5xf32, #tpu.memory_space<smem>>
    %111 = vector.broadcast %110 : f32 to vector<1x128xf32>
    %112 = arith.mulf %61, %111 : vector<1x128xf32>
    %113 = arith.addf %109, %112 : vector<1x128xf32>
    %c0_49 = arith.constant 0 : index
    %c3_50 = arith.constant 3 : index
    %114 = memref.load %arg4[%c0_49, %c3_50] : memref<3x5xf32, #tpu.memory_space<smem>>
    %115 = vector.broadcast %114 : f32 to vector<1x128xf32>
    %116 = arith.mulf %80, %115 : vector<1x128xf32>
    %117 = arith.addf %113, %116 : vector<1x128xf32>
    %c0_51 = arith.constant 0 : index
    %c4_52 = arith.constant 4 : index
    %118 = memref.load %arg4[%c0_51, %c4_52] : memref<3x5xf32, #tpu.memory_space<smem>>
    %119 = vector.broadcast %118 : f32 to vector<1x128xf32>
    %120 = arith.mulf %99, %119 : vector<1x128xf32>
    %121 = arith.addf %117, %120 : vector<1x128xf32>
    %c1_53 = arith.constant 1 : index
    %c0_54 = arith.constant 0 : index
    %122 = memref.load %arg4[%c1_53, %c0_54] : memref<3x5xf32, #tpu.memory_space<smem>>
    %123 = vector.broadcast %122 : f32 to vector<1x128xf32>
    %124 = arith.mulf %23, %123 : vector<1x128xf32>
    %c1_55 = arith.constant 1 : index
    %125 = memref.load %arg5[%c1_55] : memref<3xf32, #tpu.memory_space<smem>>
    %126 = vector.broadcast %125 : f32 to vector<1x128xf32>
    %127 = arith.addf %124, %126 : vector<1x128xf32>
    %c1_56 = arith.constant 1 : index
    %c1_57 = arith.constant 1 : index
    %128 = memref.load %arg4[%c1_56, %c1_57] : memref<3x5xf32, #tpu.memory_space<smem>>
    %129 = vector.broadcast %128 : f32 to vector<1x128xf32>
    %130 = arith.mulf %42, %129 : vector<1x128xf32>
    %131 = arith.addf %127, %130 : vector<1x128xf32>
    %c1_58 = arith.constant 1 : index
    %c2_59 = arith.constant 2 : index
    %132 = memref.load %arg4[%c1_58, %c2_59] : memref<3x5xf32, #tpu.memory_space<smem>>
    %133 = vector.broadcast %132 : f32 to vector<1x128xf32>
    %134 = arith.mulf %61, %133 : vector<1x128xf32>
    %135 = arith.addf %131, %134 : vector<1x128xf32>
    %c1_60 = arith.constant 1 : index
    %c3_61 = arith.constant 3 : index
    %136 = memref.load %arg4[%c1_60, %c3_61] : memref<3x5xf32, #tpu.memory_space<smem>>
    %137 = vector.broadcast %136 : f32 to vector<1x128xf32>
    %138 = arith.mulf %80, %137 : vector<1x128xf32>
    %139 = arith.addf %135, %138 : vector<1x128xf32>
    %c1_62 = arith.constant 1 : index
    %c4_63 = arith.constant 4 : index
    %140 = memref.load %arg4[%c1_62, %c4_63] : memref<3x5xf32, #tpu.memory_space<smem>>
    %141 = vector.broadcast %140 : f32 to vector<1x128xf32>
    %142 = arith.mulf %99, %141 : vector<1x128xf32>
    %143 = arith.addf %139, %142 : vector<1x128xf32>
    %c2_64 = arith.constant 2 : index
    %c0_65 = arith.constant 0 : index
    %144 = memref.load %arg4[%c2_64, %c0_65] : memref<3x5xf32, #tpu.memory_space<smem>>
    %145 = vector.broadcast %144 : f32 to vector<1x128xf32>
    %146 = arith.mulf %23, %145 : vector<1x128xf32>
    %c2_66 = arith.constant 2 : index
    %147 = memref.load %arg5[%c2_66] : memref<3xf32, #tpu.memory_space<smem>>
    %148 = vector.broadcast %147 : f32 to vector<1x128xf32>
    %149 = arith.addf %146, %148 : vector<1x128xf32>
    %c2_67 = arith.constant 2 : index
    %c1_68 = arith.constant 1 : index
    %150 = memref.load %arg4[%c2_67, %c1_68] : memref<3x5xf32, #tpu.memory_space<smem>>
    %151 = vector.broadcast %150 : f32 to vector<1x128xf32>
    %152 = arith.mulf %42, %151 : vector<1x128xf32>
    %153 = arith.addf %149, %152 : vector<1x128xf32>
    %c2_69 = arith.constant 2 : index
    %c2_70 = arith.constant 2 : index
    %154 = memref.load %arg4[%c2_69, %c2_70] : memref<3x5xf32, #tpu.memory_space<smem>>
    %155 = vector.broadcast %154 : f32 to vector<1x128xf32>
    %156 = arith.mulf %61, %155 : vector<1x128xf32>
    %157 = arith.addf %153, %156 : vector<1x128xf32>
    %c2_71 = arith.constant 2 : index
    %c3_72 = arith.constant 3 : index
    %158 = memref.load %arg4[%c2_71, %c3_72] : memref<3x5xf32, #tpu.memory_space<smem>>
    %159 = vector.broadcast %158 : f32 to vector<1x128xf32>
    %160 = arith.mulf %80, %159 : vector<1x128xf32>
    %161 = arith.addf %157, %160 : vector<1x128xf32>
    %c2_73 = arith.constant 2 : index
    %c4_74 = arith.constant 4 : index
    %162 = memref.load %arg4[%c2_73, %c4_74] : memref<3x5xf32, #tpu.memory_space<smem>>
    %163 = vector.broadcast %162 : f32 to vector<1x128xf32>
    %164 = arith.mulf %99, %163 : vector<1x128xf32>
    %165 = arith.addf %161, %164 : vector<1x128xf32>
    %166 = arith.maximumf %121, %143 : vector<1x128xf32>
    %167 = arith.maximumf %166, %165 : vector<1x128xf32>
    %168 = arith.subf %121, %167 : vector<1x128xf32>
    %169 = math.exp %168 : vector<1x128xf32>
    %170 = arith.subf %143, %167 : vector<1x128xf32>
    %171 = math.exp %170 : vector<1x128xf32>
    %172 = arith.subf %165, %167 : vector<1x128xf32>
    %173 = math.exp %172 : vector<1x128xf32>
    %174 = arith.addf %169, %171 : vector<1x128xf32>
    %175 = arith.addf %174, %173 : vector<1x128xf32>
    %176 = tpu.reciprocal %175 {approx = true} : vector<1x128xf32> -> vector<1x128xf32>
    %177 = arith.mulf %175, %176 : vector<1x128xf32>
    %cst = arith.constant 2.000000e+00 : f32
    %178 = vector.broadcast %cst : f32 to vector<1x128xf32>
    %179 = arith.subf %178, %177 : vector<1x128xf32>
    %180 = arith.mulf %176, %179 : vector<1x128xf32>
    %181 = arith.mulf %169, %180 : vector<1x128xf32>
    %182 = arith.mulf %171, %180 : vector<1x128xf32>
    %183 = arith.mulf %173, %180 : vector<1x128xf32>
    %184 = tpu.concatenate %181, %182, %183 in 0 : vector<1x128xf32>, vector<1x128xf32>, vector<1x128xf32> -> vector<3x128xf32>
    %c0_75 = arith.constant 0 : index
    %c0_76 = arith.constant 0 : index
    %185 = vector.load %arg6[%c0_75, %c0_76] : memref<3x128xf32, #tpu.memory_space<vmem>>, vector<3x128xf32>
    tpu.vector_store %arg6[%c0_75, %c0_76], %184 {strides = array<i32>} : memref<3x128xf32, #tpu.memory_space<vmem>>, vector<3x128xf32>,
    return
  }
  func.func @transform_0(%arg0: i32) -> (i32, i32) {
    %c0_i32 = arith.constant 0 : i32
    %c0_i32_0 = arith.constant 0 : i32
    return %c0_i32, %arg0 : i32, i32
  }
  func.func @transform_1(%arg0: i32) -> (i32, i32) {
    %c0_i32 = arith.constant 0 : i32
    %c0_i32_0 = arith.constant 0 : i32
    %c0_i32_1 = arith.constant 0 : i32
    return %c0_i32, %c0_i32_0 : i32, i32
  }
  func.func @transform_2(%arg0: i32) -> i32 {
    %c0_i32 = arith.constant 0 : i32
    %c0_i32_0 = arith.constant 0 : i32
    return %c0_i32 : i32
  }
  func.func @transform_3(%arg0: i32) -> (i32, i32) {
    %c0_i32 = arith.constant 0 : i32
    %c0_i32_0 = arith.constant 0 : i32
    %c0_i32_1 = arith.constant 0 : i32
    return %c0_i32, %c0_i32_0 : i32, i32
  }
  func.func @transform_4(%arg0: i32) -> i32 {
    %c0_i32 = arith.constant 0 : i32
    %c0_i32_0 = arith.constant 0 : i32
    return %c0_i32 : i32
  }
  func.func @transform_5(%arg0: i32) -> (i32, i32) {
    %c0_i32 = arith.constant 0 : i32
    %c0_i32_0 = arith.constant 0 : i32
    return %c0_i32, %arg0 : i32, i32
  }
}

</mosaic_0001>

<bundles_post_ra>
// kernel: mlp_forward.1
= control target key start
LH: loop header
LB: loop body
LE: loop exit
PB: predicated region body
PF: predicated region fallthrough
CT: control target
= control target key end

     0   :  { %10 = vsyncpa [#allocation3], 0  ;;  %s607_s0 = inlined_call_operand.vmem [shape: f32[4,128], index: 0, kind: input, shape index: {}]   ;;  %s608_s1 = inlined_call_operand.vmem [shape: f32[5,4], index: 1, kind: input, shape index: {}]   ;;  %s609_s2 = inlined_call_operand.vmem [shape: f32[5], index: 2, kind: input, shape index: {}]   ;;  %s610_s3 = inlined_call_operand.vmem [shape: f32[3,5], index: 3, kind: input, shape index: {}]   ;;  %s611_s4 = inlined_call_operand.vmem [shape: f32[3], index: 4, kind: input, shape index: {}]   ;;  %s612_s5 = inlined_call_operand.vmem [shape: f32[3,128], index: 5, kind: output, shape index: {}]  }
   0x1   :  { %11 = vsyncpa [#allocation5], 0  ;;  %s31_s20 = sshll.u32 %s609_s2, 4  ;;  %s32_s20 = int_to_ptr.vmem [resolvable:$true] %s31_s20 }
   0x2   :  { %12 = vsyncpa [#allocation8], 0  ;;  %s21_s23 = sshll.u32 %s608_s1, 4  ;;  %s374_s24 = scalar_lea.vmem %s32_s20, 16  ;;  %s22_s23 = int_to_ptr.vmem [resolvable:$true] %s21_s23 }
   0x3   :  { %p375_p0 = scmp.ne.s32.totalorder %s32_s20, %s374_s24  ;;  %p379_p1 = scmp.lt.s32.totalorder %s32_s20, %s32_s20 }
   0x4   :  { %p380_p2 = scmp.lt.s32.totalorder %s374_s24, %s374_s24 }
   0x6   :  { %p381_p3 = por %p380_p2, %p379_p1 }
   0x8   :  { %p382_p4 = pnand %p381_p3, %p375_p0 }
   0xa   :  { %385 = shalt.err (!%p382_p4)
}
   0xb   :  { %s428_s25 = smov [#allocation4]   ;;  %s386_s26 = scalar_lea.vmem %s22_s23, 128 }
   0xc   :  { %34 = dma.vmem_to_smem %s32_s20, 16, %s428_s25, [#allocation5]  }
   0xd   :  { %p387_p5 = scmp.ne.s32.totalorder %s22_s23, %s386_s26  ;;  %p391_p6 = scmp.lt.s32.totalorder %s22_s23, %s22_s23 }
   0xe   :  { %p392_p7 = scmp.lt.s32.totalorder %s386_s26, %s386_s26 }
  0x10   :  { %p393_p8 = por %p392_p7, %p391_p6 }
  0x12   :  { %p394_p9 = pnand %p393_p8, %p387_p5 }
  0x14   :  { %397 = shalt.err (!%p394_p9)
}
  0x15   :  { %s429_s2 = smov [#allocation2]   ;;  %s41_s28 = sshll.u32 %s610_s3, 4  ;;  %s42_s28 = int_to_ptr.vmem [resolvable:$true] %s41_s28 }
  0x16   :  { %24 = dma.vmem_to_smem %s22_s23, 128, %s429_s2, [#allocation3]  }
  0x17   :  { %s51_s6 = sshll.u32 %s611_s4, 4  ;;  %s398_s7 = scalar_lea.vmem %s42_s28, 64  ;;  %s52_s6 = int_to_ptr.vmem [resolvable:$true] %s51_s6 }
  0x18   :  { %p399_p10 = scmp.ne.s32.totalorder %s42_s28, %s398_s7  ;;  %p403_p11 = scmp.lt.s32.totalorder %s42_s28, %s42_s28 }
  0x19   :  { %p404_p12 = scmp.lt.s32.totalorder %s398_s7, %s398_s7 }
  0x1b   :  { %p405_p13 = por %p404_p12, %p403_p11 }
  0x1d   :  { %p406_p0 = pnand %p405_p13, %p399_p10 }
  0x1f   :  { %409 = shalt.err (!%p406_p0)
}
  0x20   :  { %s430_s8 = smov [#allocation6]   ;;  %s410_s9 = scalar_lea.vmem %s52_s6, 16 }
  0x21   :  { %44 = dma.vmem_to_smem %s42_s28, 64, %s430_s8, [#allocation5]  }
  0x22   :  { %p411_p1 = scmp.ne.s32.totalorder %s52_s6, %s410_s9  ;;  %p415_p2 = scmp.lt.s32.totalorder %s52_s6, %s52_s6 }
  0x23   :  { %p416_p3 = scmp.lt.s32.totalorder %s410_s9, %s410_s9 }
  0x25   :  { %p417_p4 = por %p416_p3, %p415_p2 }
  0x27   :  { %p418_p5 = pnand %p417_p4, %p411_p1 }
  0x29   :  { %421 = shalt.err (!%p418_p5)
}
  0x2a   :  { %s431_s3 = smov [#allocation7]  }
  0x2b   :  { %54 = dma.vmem_to_smem %s52_s6, 16, %s431_s3, [#allocation8]  }
  0x2c   :  { %422 = dma.done.wait [#allocation3], 128  }
  0x2d   :  { %423 = vsyncadd [#allocation3], 4294967168 }
  0x2e   :  { %424 = dma.done.wait [#allocation5], 80  }
  0x2f   :  { %425 = vsyncadd [#allocation5], 4294967216 }
  0x30   :  { %426 = dma.done.wait [#allocation8], 16  }
  0x31   :  { %427 = vsyncadd [#allocation8], 4294967280 }
  0x32   :  { %67 = sfence }
  0x33   :  { %s69_s4 = sld [smem:[#allocation2]]  ;;  %s313_s11 = sld [smem:[#allocation2 + $0x1]]  ;;  %v481_v0 = vld [vmem:[%s607_s0] sm:$0xf]  ;;  %vm301_vm0 = vcmask 1040384   ;;  %vm303_vm1 = vcmask 1041408  }
  0x34   :  { %s72_s10 = sld [smem:[#allocation4]]  ;;  %s314_s12 = sld [smem:[#allocation2 + $0x2]] }
  0x35   :  { %s315_s13 = sld [smem:[#allocation2 + $0x3]]  ;;  %s316_s14 = sld [smem:[#allocation2 + $0x80]] }
  0x36   :  { %s474_s15 = sld [smem:[#allocation4 + $0x1]]  ;;  %s319_s19 = sld [smem:[#allocation2 + $0x82]] }
  0x37   :  { %s476_s16 = sld [smem:[#allocation2 + $0x81]]  ;;  %s483_s20 = sld [smem:[#allocation2 + $0x83]] }
  0x38   :  { %s485_s21 = sld [smem:[#allocation2 + $0x100]]  ;;  %s487_s22 = sld [smem:[#allocation4 + $0x2]] }
  0x39   :  { %v70_v1 = vstv %s69_s4  ;;  %s489_s23 = sld [smem:[#allocation2 + $0x101]]  ;;  %s491_s24 = sld [smem:[#allocation2 + $0x102]]  ;;  %v76_v4 = vstv %s313_s11 }
  0x3a   :  { %v73_v2 = vstv %s72_s10  ;;  %v71_v3 = vmul.f32 %v70_v1, %v481_v0  ;;  %v83_v5 = vstv %s314_s12  ;;  %s494_s0 = sld [smem:[#allocation2 + $0x103]]  ;;  %v77_v6 = vmul.f32 %v76_v4, %v481_v0  ;;  %s498_s25 = sld [smem:[#allocation2 + $0x180]] }
  0x3b   :  { %v84_v7 = vmul.f32 %v83_v5, %v481_v0  ;;  %v90_v8 = vstv %s315_s13  ;;  %v98_v9 = vstv %s316_s14  ;;  %s503_s26 = sld [smem:[#allocation4 + $0x3]]  ;;  %s506_s2 = sld [smem:[#allocation2 + $0x181]] }
  0x3c   :  { %v74_v10 = vadd.f32 %v73_v2, %v71_v3  ;;  %v91_v11 = vmul.f32 %v90_v8, %v481_v0  ;;  %v99_v12 = vmul.f32 %v98_v9, %v481_v0  ;;  %v101_v13 = vstv %s474_s15  ;;  %s510_s1 = sld [smem:[#allocation2 + $0x182]]  ;;  %s512_s27 = sld [smem:[#allocation2 + $0x183]] }
  0x3d   :  { %v79_v14 = vrot.slane %v77_v6, 1  ;;  %v86_v15 = vrot.slane %v84_v7, 2  ;;  %v104_v16 = vstv %s476_s16  ;;  %v111_v17 = vstv %s319_s19  ;;  %s517_s28 = sld [smem:[#allocation2 + $0x200]]  ;;  %s519_s29 = sld [smem:[#allocation4 + $0x4]] }
  0x3e   :  { %v93_v18 = vrot.slane %v91_v11, 3  ;;  %v102_v19 = vadd.f32 %v101_v13, %v99_v12  ;;  %v105_v20 = vmul.f32 %v104_v16, %v481_v0  ;;  %v112_v21 = vmul.f32 %v111_v17, %v481_v0  ;;  %s526_s30 = sld [smem:[#allocation2 + $0x201]]  ;;  %s528_s6 = sld [smem:[#allocation2 + $0x202]] }
  0x3f   :  { %v81_v22 = vadd.f32 %v79_v14, %v74_v10  ;;  %v118_v23 = vstv %s483_s20  ;;  %v126_v24 = vstv %s485_s21  ;;  %v129_v25 = vstv %s487_s22  ;;  %s534_s7 = sld [smem:[#allocation2 + $0x203]]  ;;  %s539_s8 = sld [smem:[#allocation6]] }
  0x40   :  { %v107_v26 = vrot.slane %v105_v20, 1  ;;  %v114_v27 = vrot.slane %v112_v21, 2  ;;  %v119_v28 = vmul.f32 %v118_v23, %v481_v0  ;;  %v127_v29 = vmul.f32 %v126_v24, %v481_v0  ;;  %s542_s9 = sld [smem:[#allocation7]]  ;;  %s544_s3 = sld [smem:[#allocation6 + $0x1]] }
  0x41   :  { %v88_v30 = vadd.f32 %v86_v15, %v81_v22  ;;  %v132_v31 = vstv %s489_s23  ;;  %v139_v32 = vstv %s491_s24  ;;  %v146_v33 = vstv %s494_s0  ;;  %s550_s4 = sld [smem:[#allocation6 + $0x80]]  ;;  %s552_s10 = sld [smem:[#allocation7 + $0x1]] }
  0x42   :  { %v109_v34 = vadd.f32 %v107_v26, %v102_v19  ;;  %v121_v35 = vrot.slane %v119_v28, 3  ;;  %v130_v36 = vadd.f32 %v129_v25, %v127_v29  ;;  %v133_v37 = vmul.f32 %v132_v31, %v481_v0  ;;  %s559_s11 = sld [smem:[#allocation6 + $0x2]]  ;;  %s561_s12 = sld [smem:[#allocation6 + $0x81]] }
  0x43   :  { %v95_v38 = vadd.f32 %v93_v18, %v88_v30  ;;  %v140_v39 = vmul.f32 %v139_v32, %v481_v0  ;;  %v147_v40 = vmul.f32 %v146_v33, %v481_v0  ;;  %v154_v41 = vstv %s498_s25  ;;  %s564_s13 = sld [smem:[#allocation6 + $0x100]]  ;;  %s568_s14 = sld [smem:[#allocation6 + $0x82]] }
  0x44   :  { %v116_v42 = vadd.f32 %v114_v27, %v109_v34  ;;  %v135_v43 = vrot.slane %v133_v37, 1  ;;  %v155_v44 = vmul.f32 %v154_v41, %v481_v0  ;;  %v157_v45 = vstv %s503_s26  ;;  %s570_s15 = sld [smem:[#allocation7 + $0x2]]  ;;  %s573_s16 = sld [smem:[#allocation6 + $0x101]] }
  0x45   :  { %356 = vtanh.f32 %v95_v38  ;;  %v142_v46 = vrot.slane %v140_v39, 2  ;;  %v149_v47 = vrot.slane %v147_v40, 3  ;;  %v160_v48 = vstv %s506_s2  ;;  %s575_s17 = sld [smem:[#allocation6 + $0x102]]  ;;  %s580_s18 = sld [smem:[#allocation6 + $0x3]] }
  0x46   :  { %v123_v49 = vadd.f32 %v121_v35, %v116_v42  ;;  %v137_v50 = vadd.f32 %v135_v43, %v130_v36  ;;  %v158_v51 = vadd.f32 %v157_v45, %v155_v44  ;;  %v161_v52 = vmul.f32 %v160_v48, %v481_v0  ;;  %s584_s19 = sld [smem:[#allocation6 + $0x83]]  ;;  %s591_s21 = sld [smem:[#allocation6 + $0x4]] }
  0x47   :  { %v167_v53 = vstv %s510_s1  ;;  %v174_v54 = vstv %s512_s27  ;;  %v182_v55 = vstv %s517_s28  ;;  %v185_v56 = vstv %s519_s29  ;;  %s586_s20 = sld [smem:[#allocation6 + $0x103]]  ;;  %s595_s22 = sld [smem:[#allocation6 + $0x84]] }
  0x48   :  { %358 = vtanh.f32 %v123_v49  ;;  %v144_v57 = vadd.f32 %v142_v46, %v137_v50  ;;  %v163_v58 = vrot.slane %v161_v52, 1  ;;  %v168_v59 = vmul.f32 %v167_v53, %v481_v0  ;;  %s351_s23 = sld [smem:[#allocation6 + $0x104]] }
  0x49   :  { %v175_v60 = vmul.f32 %v174_v54, %v481_v0  ;;  %v183_v61 = vmul.f32 %v182_v55, %v481_v0  ;;  %v188_v62 = vstv %s526_s30  ;;  %v195_v63 = vstv %s528_s6 }
  0x4a   :  { %v151_v1 = vadd.f32 %v149_v47, %v144_v57  ;;  %v165_v2 = vadd.f32 %v163_v58, %v158_v51  ;;  %v170_v3 = vrot.slane %v168_v59, 2  ;;  %v189_v4 = vmul.f32 %v188_v62, %v481_v0 }
  0x4b   :  { %v177_v5 = vrot.slane %v175_v60, 3  ;;  %v186_v6 = vadd.f32 %v185_v56, %v183_v61  ;;  %v196_v7 = vmul.f32 %v195_v63, %v481_v0  ;;  %v202_v8 = vstv %s534_s7 }
  0x4c   :  { %360 = vtanh.f32 %v151_v1  ;;  %v172_v9 = vadd.f32 %v170_v3, %v165_v2  ;;  %v191_v10 = vrot.slane %v189_v4, 1  ;;  %v203_v11 = vmul.f32 %v202_v8, %v481_v0 }
  0x4d   :  { %v198_v12 = vrot.slane %v196_v7, 2  ;;  %v210_v13 = vstv %s539_s8  ;;  %v213_v18 = vstv %s542_s9  ;;  %v216_v19 = vstv %s544_s3 }
  0x4e   :  { %v179_v14 = vadd.f32 %v177_v5, %v172_v9  ;;  %v193_v15 = vadd.f32 %v191_v10, %v186_v6  ;;  %v205_v16 = vrot.slane %v203_v11, 3  ;;  %v232_v20 = vstv %s550_s4 }
  0x4f   :  { %v357_v17 = vpop.eup %356  ;;  %v235_v21 = vstv %s552_s10  ;;  %v220_v24 = vstv %s559_s11  ;;  %v238_v25 = vstv %s561_s12  ;;  %v254_v30 = vstv %s564_s13 }
  0x50   :  { %362 = vtanh.f32 %v179_v14  ;;  %v200_v0 = vadd.f32 %v198_v12, %v193_v15  ;;  %v211_v22 = vmul.f32 %v357_v17, %v210_v13  ;;  %v233_v23 = vmul.f32 %v357_v17, %v232_v20 }
  0x51   :  { %v255_v33 = vmul.f32 %v357_v17, %v254_v30  ;;  %v257_v34 = vstv %s570_s15  ;;  %v242_v35 = vstv %s568_s14  ;;  %v260_v36 = vstv %s573_s16 }
  0x52   :  { %v359_v26 = vpop.eup %358  ;;  %v207_v27 = vadd.f32 %v205_v16, %v200_v0  ;;  %v214_v28 = vadd.f32 %v213_v18, %v211_v22  ;;  %v236_v29 = vadd.f32 %v235_v21, %v233_v23  ;;  %v264_v37 = vstv %s575_s17 }
  0x53   :  { %v217_v31 = vmul.f32 %v359_v26, %v216_v19  ;;  %v239_v32 = vmul.f32 %v359_v26, %v238_v25  ;;  %v258_v40 = vadd.f32 %v257_v34, %v255_v33  ;;  %v261_v41 = vmul.f32 %v359_v26, %v260_v36 }
  0x54   :  { %364 = vtanh.f32 %v207_v27  ;;  %v224_v47 = vstv %s580_s18  ;;  %v246_v48 = vstv %s584_s19  ;;  %v268_v49 = vstv %s586_s20 }
  0x55   :  { %v218_v38 = vadd.f32 %v217_v31, %v214_v28  ;;  %v240_v39 = vadd.f32 %v239_v32, %v236_v29  ;;  %v262_v45 = vadd.f32 %v261_v41, %v258_v40  ;;  %v228_v57 = vstv %s591_s21 }
  0x56   :  { %v361_v42 = vpop.eup %360  ;;  %v250_v58 = vstv %s595_s22  ;;  %v272_v59 = vstv %s351_s23 }
  0x57   :  { %v221_v43 = vmul.f32 %v361_v42, %v220_v24  ;;  %v243_v44 = vmul.f32 %v361_v42, %v242_v35  ;;  %v265_v46 = vmul.f32 %v361_v42, %v264_v37 }
  0x59   :  { %v222_v50 = vadd.f32 %v221_v43, %v218_v38  ;;  %v244_v51 = vadd.f32 %v243_v44, %v240_v39  ;;  %v266_v52 = vadd.f32 %v265_v46, %v262_v45 }
  0x5a   :  { %v363_v53 = vpop.eup %362 }
  0x5b   :  { %v225_v54 = vmul.f32 %v363_v53, %v224_v47  ;;  %v247_v55 = vmul.f32 %v363_v53, %v246_v48  ;;  %v269_v56 = vmul.f32 %v363_v53, %v268_v49 }
  0x5d   :  { %v226_v60 = vadd.f32 %v225_v54, %v222_v50  ;;  %v248_v61 = vadd.f32 %v247_v55, %v244_v51  ;;  %v270_v62 = vadd.f32 %v269_v56, %v266_v52 }
  0x5e   :  { %v365_v63 = vpop.eup %364 }
  0x5f   :  { %v229_v1 = vmul.f32 %v365_v63, %v228_v57  ;;  %v251_v2 = vmul.f32 %v365_v63, %v250_v58  ;;  %v273_v3 = vmul.f32 %v365_v63, %v272_v59 }
  0x61   :  { %v230_v4 = vadd.f32 %v229_v1, %v226_v60  ;;  %v252_v5 = vadd.f32 %v251_v2, %v248_v61  ;;  %v274_v6 = vadd.f32 %v273_v3, %v270_v62 }
  0x63   :  { %v275_v7 = vmax.f32 %v230_v4, %v252_v5 }
  0x65   :  { %v276_v8 = vmax.f32 %v275_v7, %v274_v6 }
  0x67   :  { %v277_v9 = vsub.f32 %v230_v4, %v276_v8  ;;  %v280_v10 = vsub.f32 %v252_v5, %v276_v8  ;;  %v283_v11 = vsub.f32 %v274_v6, %v276_v8 }
  0x69   :  { %v278_v12 = vmul.f32 1.442695, %v277_v9  ;;  %v281_v13 = vmul.f32 1.442695, %v280_v10  ;;  %v284_v14 = vmul.f32 1.442695, %v283_v11 }
  0x6b   :  { %366 = vpow2.f32 %v278_v12 }
  0x6c   :  { %368 = vpow2.f32 %v281_v13 }
  0x6d   :  { %370 = vpow2.f32 %v284_v14 }
  0x75   :  { %v367_v15 = vpop.eup %366 }
  0x76   :  { %v369_v16 = vpop.eup %368 }
  0x77   :  { %v371_v17 = vpop.eup %370  ;;  %v286_v18 = vadd.f32 %v369_v16, %v367_v15 }
  0x79   :  { %v287_v19 = vadd.f32 %v371_v17, %v286_v18 }
  0x7b   :  { %372 = vrcp.f32 %v287_v19 }
  0x85   :  { %v373_v20 = vpop.eup %372 }
  0x86   :  { %v289_v21 = vmul.f32 %v373_v20, %v287_v19 }
  0x88   :  { %v290_v0 = vsub.f32 2.0, %v289_v21 }
  0x8a   :  { %v291_v22 = vmul.f32 %v373_v20, %v290_v0 }
  0x8c   :  { %v292_v23 = vmul.f32 %v367_v15, %v291_v22  ;;  %v293_v24 = vmul.f32 %v369_v16, %v291_v22  ;;  %v294_v25 = vmul.f32 %v371_v17, %v291_v22 }
  0x8e   :  { %v296_v26 = vrot.slane %v293_v24, 7  ;;  %v299_v27 = vrot.slane %v294_v25, 6 }
  0x90   :  { %v302_v28 = vsel %vm301_vm0, %v292_v23, %v296_v26 }
  0x91   :  { %v304_v29 = vsel %vm303_vm1, %v302_v28, %v299_v27 }
  0x92   :  { %305 = vst [vmem:[%s612_s5] sm:$0x7] %v304_v29 }
  0x93   :  { %310 = vsyncpa [#allocation3], 1 }
  0x94   :  { %311 = vsyncpa [#allocation5], 1 }
  0x95   :  { %312 = vsyncpa [#allocation8], 1 }

</bundles_post_ra>
